<compile_context>
chip_gen: v6e
topology: v6e:2x2x1
jax: 0.10.0
libtpu: 0.0.40
codegen_flags: <defaults>
</compile_context>

<pallas_src>
import functools

import jax
import jax.numpy as jnp
from jax import lax
from jax.experimental import pallas as pl
from jax.experimental.pallas import tpu as pltpu


def _vmem_limit_bytes():
    """Generation-aware scoped-VMEM budget (~96 MiB on v5e/v6e, ~48 MiB on v7x)."""
    try:
        cap = int(pltpu.get_tpu_info().vmem_capacity_bytes)
    except Exception:
        cap = 64 * 1024 * 1024          # conservative fallback (v7x-sized)
    return max(32 * 1024 * 1024, min(cap * 3 // 4, 96 * 1024 * 1024))


# ----------------------------------------------------------------------------
# Kernel 0: one-shot Binarizer  W_masked = where(mask_real > thr, W, 0)
#   Run once per weight; the linear kernels below never see the mask.
# ----------------------------------------------------------------------------
def _binarize_weight_kernel(w_ref, m_ref, o_ref, *, threshold):
    o_ref[...] = jnp.where(m_ref[...] > threshold, w_ref[...],
                           jnp.zeros((), w_ref.dtype))


def binarize_weight(w, mask_real, threshold, *, vmem_limit, tr=256):
    R, C = w.shape
    tr = R if R <= tr else tr
    return pl.pallas_call(
        functools.partial(_binarize_weight_kernel, threshold=float(threshold)),
        out_shape=jax.ShapeDtypeStruct((R, C), w.dtype),
        grid=(pl.cdiv(R, tr),),
        in_specs=[pl.BlockSpec((tr, C), lambda i: (i, 0)),
                  pl.BlockSpec((tr, C), lambda i: (i, 0))],
        out_specs=pl.BlockSpec((tr, C), lambda i: (i, 0)),
        compiler_params=pltpu.CompilerParams(
            dimension_semantics=("parallel",),
            vmem_limit_bytes=vmem_limit),
    )(w, mask_real)


# ----------------------------------------------------------------------------
# Kernel 1: row-tiled NT linear  y = x @ W^T + b, split into num_splits
#   lane-dense output chunks (fused QKV -> 3 outputs, fused KV -> 2, else 1).
# ----------------------------------------------------------------------------
def _linear_nt_split_kernel(x_ref, w_ref, b_ref, *o_refs):
    # Contract the last dims of both operands: MXU consumes W in stored layout.
    y = lax.dot_general(x_ref[...], w_ref[...],
                        dimension_numbers=(((1,), (1,)), ((), ())),
                        preferred_element_type=jnp.float32)        # (tm, Eo)
    y = y + b_ref[...]
    ns = len(o_refs)
    eo = y.shape[1] // ns
    for i, o_ref in enumerate(o_refs):
        o_ref[...] = y[:, i * eo:(i + 1) * eo].astype(o_ref.dtype)


def linear_nt(x, w, bias, *, num_splits=1, tm=512, vmem_limit=64 * 1024 * 1024):
    M, Ei = x.shape
    Eo = w.shape[0]
    assert Eo % num_splits == 0
    eo = Eo // num_splits
    tm = M if M <= tm else tm
    out_shape = tuple(jax.ShapeDtypeStruct((M, eo), x.dtype)
                      for _ in range(num_splits))
    out_specs = tuple(pl.BlockSpec((tm, eo), lambda i: (i, 0))
                      for _ in range(num_splits))
    return pl.pallas_call(
        _linear_nt_split_kernel,
        out_shape=out_shape,
        grid=(pl.cdiv(M, tm),),
        in_specs=[
            pl.BlockSpec((tm, Ei), lambda i: (i, 0)),   # activations: row-tiled
            pl.BlockSpec((Eo, Ei), lambda i: (0, 0)),   # masked weight: resident
            pl.BlockSpec((1, Eo), lambda i: (0, 0)),    # bias: resident
        ],
        out_specs=out_specs,
        compiler_params=pltpu.CompilerParams(
            dimension_semantics=("parallel",),
            vmem_limit_bytes=vmem_limit),
    )(x, w, bias.reshape(1, Eo))


# ----------------------------------------------------------------------------
# Kernel 2: multi-head attention core.
#   One grid step = one block of `bn` batches x all H heads.
#   q_ref: (L, bn, 1, E)   k_ref/v_ref: (S, bn, 1, E)     (lane dim = E)
#   o_ref: (L, bn, 1, E)   p_ref (optional): (bn, L, S)   (head-averaged)
#   o_acc: (L, E) f32 VMEM scratch — per-head results land here, one lane-dense
#          store per batch, no concatenate / long accumulator live-ranges.
# ----------------------------------------------------------------------------
def _mha_attention_kernel(q_ref, k_ref, v_ref, o_ref, *rest,
                          num_heads, head_dim, scale, need_weights):
    if need_weights:
        p_ref, o_acc = rest
    else:
        (o_acc,) = rest
    H, Dh = num_heads, head_dim
    bn = q_ref.shape[1]
    inv_h = 1.0 / H
    for n in range(bn):
        # Lane-dense (seq, E) loads, once per batch; heads sliced in-register.
        # No f32 upcast ahead of the MXU (bf16 stays bf16; acc in f32).
        q = q_ref[:, n, 0, :] * scale          # scale folded into q (L, E)
        k = k_ref[:, n, 0, :]                  # (S, E)
        v = v_ref[:, n, 0, :]                  # (S, E)
        p_sum = None
        for h in range(H):
            lo, hi = h * Dh, (h + 1) * Dh
            s = lax.dot_general(q[:, lo:hi], k[:, lo:hi],
                                dimension_numbers=(((1,), (1,)), ((), ())),
                                preferred_element_type=jnp.float32)  # (L, S)
            m = jnp.max(s, axis=-1, keepdims=True)
            e = jnp.exp(s - m)
            denom = jnp.sum(e, axis=-1, keepdims=True)
            if need_weights:
                p = e / denom                           # exact: probs are returned
                p_sum = p if p_sum is None else p_sum + p
            else:
                p = e * pl.reciprocal(denom, approx=True)   # EUP slot, ~free
            o_acc[:, pl.ds(lo, Dh)] = jnp.dot(p.astype(v.dtype), v[:, lo:hi],
                                              preferred_element_type=jnp.float32)
        o_ref[:, n, 0, :] = o_acc[...].astype(o_ref.dtype)   # lane-dense store
        if need_weights:
            p_ref[n, :, :] = (p_sum * inv_h).astype(p_ref.dtype)


def _pick_bn(L, S, E, N, itemsize, need_weights, vmem_budget):
    """Batch-block size from the VMEM budget; keep >=2 parallel grid steps."""
    # TODO(synk): flash-style S/L tiling would bound this by tile size instead.
    def block_bytes(bn):
        b = 2 * (L + 2 * S) * bn * E * itemsize   # q,k,v blocks (double-buffered)
        b += 2 * L * bn * E * itemsize            # attention-output block
        if need_weights:
            b += 2 * bn * L * S * itemsize        # probability block
        return b + L * E * 4                      # f32 accumulator scratch
    bn = min(N, 8)
    while bn > 1 and block_bytes(bn) > (vmem_budget * 3) // 4:
        bn -= 1
    if N >= 2 and bn >= N:
        bn = (N + 1) // 2      # >= 2 "parallel" steps so v7x's 2nd TC has work
    return max(bn, 1)


def _attention(q_arr, k_arr, v_arr, *, num_heads, need_weights, vmem_limit):
    # q_arr: (L, N, 1, E); k_arr/v_arr: (S, N, 1, E).  Last two block dims are
    # always (1, E) == full dims, so the (8,128) rule is trivially satisfied.
    L, N, _, E = q_arr.shape
    S = k_arr.shape[0]
    H = num_heads
    Dh = E // H
    scale = 1.0 / (Dh ** 0.5)
    dtype = q_arr.dtype
    bn = _pick_bn(L, S, E, N, jnp.dtype(dtype).itemsize, need_weights, vmem_limit)

    grid = (pl.cdiv(N, bn),)
    in_specs = [
        pl.BlockSpec((L, bn, 1, E), lambda nb: (0, nb, 0, 0)),
        pl.BlockSpec((S, bn, 1, E), lambda nb: (0, nb, 0, 0)),
        pl.BlockSpec((S, bn, 1, E), lambda nb: (0, nb, 0, 0)),
    ]
    o_shape = jax.ShapeDtypeStruct((L, N, 1, E), dtype)     # already seq-first
    o_spec = pl.BlockSpec((L, bn, 1, E), lambda nb: (0, nb, 0, 0))
    kernel = functools.partial(_mha_attention_kernel, num_heads=H, head_dim=Dh,
                               scale=scale, need_weights=need_weights)
    cparams = pltpu.CompilerParams(dimension_semantics=("parallel",),
                                   vmem_limit_bytes=vmem_limit)
    scratch = [pltpu.VMEM((L, E), jnp.float32)]

    if need_weights:
        p_shape = jax.ShapeDtypeStruct((N, L, S), dtype)    # input dtype (PyTorch)
        p_spec = pl.BlockSpec((bn, L, S), lambda nb: (nb, 0, 0))
        o, p = pl.pallas_call(
            kernel, out_shape=(o_shape, p_shape), grid=grid,
            in_specs=in_specs, out_specs=(o_spec, p_spec),
            scratch_shapes=scratch, compiler_params=cparams,
        )(q_arr, k_arr, v_arr)
        return o, p

    o = pl.pallas_call(
        kernel, out_shape=o_shape, grid=grid,
        in_specs=in_specs, out_specs=o_spec,
        scratch_shapes=scratch, compiler_params=cparams,
    )(q_arr, k_arr, v_arr)
    return o, None


# ----------------------------------------------------------------------------
# Full module forward
# ----------------------------------------------------------------------------
def elementwise_mha_forward(query, key, value, params, *, num_heads, threshold,
                            need_weights=True, tm=512):
    L, N, E = query.shape
    S = key.shape[0]
    H = num_heads
    Dh = E // H
    assert Dh * H == E
    vmem_limit = _vmem_limit_bytes()

    # Binarize + mask the weights ONCE; projections stream only masked W.
    w_in = binarize_weight(params["in_proj_weight"], params["in_proj_mask"],
                           threshold, vmem_limit=vmem_limit)
    w_out = binarize_weight(params["out_proj_weight"], params["out_proj_mask"],
                            threshold, vmem_limit=vmem_limit)
    b_in, b_out = params["in_proj_bias"], params["out_proj_bias"]

    if (query is key) and (key is value):
        # Self-attention: single fused pass with the full (3E, E) weight; the
        # kernel emits q/k/v as three separate lane-dense outputs.
        q2d, k2d, v2d = linear_nt(query.reshape(L * N, E), w_in, b_in,
                                  num_splits=3, tm=tm, vmem_limit=vmem_limit)
    elif key is value:
        (q2d,) = linear_nt(query.reshape(L * N, E), w_in[:E], b_in[:E],
                           num_splits=1, tm=tm, vmem_limit=vmem_limit)
        k2d, v2d = linear_nt(key.reshape(S * N, E), w_in[E:], b_in[E:],
                             num_splits=2, tm=tm, vmem_limit=vmem_limit)
    else:
        (q2d,) = linear_nt(query.reshape(L * N, E), w_in[:E], b_in[:E],
                           num_splits=1, tm=tm, vmem_limit=vmem_limit)
        (k2d,) = linear_nt(key.reshape(S * N, E), w_in[E:2 * E], b_in[E:2 * E],
                           num_splits=1, tm=tm, vmem_limit=vmem_limit)
        (v2d,) = linear_nt(value.reshape(S * N, E), w_in[2 * E:], b_in[2 * E:],
                           num_splits=1, tm=tm, vmem_limit=vmem_limit)

    # Contiguous reshapes only (free); lane dim stays the full E.
    q_arr = q2d.reshape(L, N, 1, E)
    k_arr = k2d.reshape(S, N, 1, E)
    v_arr = v2d.reshape(S, N, 1, E)

    attn_ln1e, probs = _attention(q_arr, k_arr, v_arr, num_heads=H,
                                  need_weights=need_weights,
                                  vmem_limit=vmem_limit)

    # Attention output is already seq-first: (L, N, 1, E) -> (L*N, E) rows;
    # the per-row out-projection then reshapes straight to (L, N, E).
    out2d = linear_nt(attn_ln1e.reshape(L * N, E), w_out, b_out,
                      num_splits=1, tm=tm, vmem_limit=vmem_limit)[0]
    attn_output = out2d.reshape(L, N, E)         # no trailing transpose
    return attn_output, probs


# ----------------------------------------------------------------------------
# Pure-JAX reference (for correctness check)
# ----------------------------------------------------------------------------
def reference_forward(query, key, value, params, *, num_heads, threshold):
    L, N, E = query.shape
    S = key.shape[0]
    H, Dh = num_heads, E // num_heads
    w_in = (params["in_proj_mask"] > threshold).astype(jnp.float32) * params["in_proj_weight"]
    w_out = (params["out_proj_mask"] > threshold).astype(jnp.float32) * params["out_proj_weight"]
    b_in, b_out = params["in_proj_bias"], params["out_proj_bias"]

    qp = query @ w_in[:E].T + b_in[:E]
    kp = key @ w_in[E:2 * E].T + b_in[E:2 * E]
    vp = value @ w_in[2 * E:].T + b_in[2 * E:]

    def to_heads(x, seq):
        return x.reshape(seq, N, H, Dh).transpose(1, 2, 0, 3).reshape(N * H, seq, Dh)

    qh, kh, vh = to_heads(qp, L), to_heads(kp, S), to_heads(vp, S)
    s = jnp.einsum("bld,bsd->bls", qh, kh) / (Dh ** 0.5)
    p = jax.nn.softmax(s, axis=-1)
    o = jnp.einsum("bls,bsd->bld", p, vh)
    o = o.reshape(N, H, L, Dh).transpose(2, 0, 1, 3).reshape(L, N, E)
    out = o @ w_out.T + b_out
    weights = p.reshape(N, H, L, S).mean(axis=1)
    return out, weights


if __name__ == "__main__":
    # Small, module-consistent shapes: seq=8, batch=2, embed_dim=32, heads=4.
    L, S, N, E, H = 8, 8, 2, 32, 4
    mask_scale = 0.01
    threshold = mask_scale / 2.0   # binarizer threshold (mask_init='uniform')

    key0 = jax.random.PRNGKey(0)
    ks = jax.random.split(key0, 9)
    params = {
        "in_proj_weight": jax.random.normal(ks[0], (3 * E, E), jnp.float32) * 0.05,
        "in_proj_bias":   jax.random.normal(ks[1], (3 * E,), jnp.float32) * 0.01,
        "in_proj_mask":   jax.random.uniform(ks[2], (3 * E, E), jnp.float32,
                                             0.0, mask_scale),
        "out_proj_weight": jax.random.normal(ks[3], (E, E), jnp.float32) * 0.05,
        "out_proj_bias":   jax.random.normal(ks[4], (E,), jnp.float32) * 0.01,
        "out_proj_mask":   jax.random.uniform(ks[5], (E, E), jnp.float32,
                                              0.0, mask_scale),
    }
    query = jax.random.normal(ks[6], (L, N, E), jnp.float32)
    key_t = jax.random.normal(ks[7], (S, N, E), jnp.float32)
    value = jax.random.normal(ks[8], (S, N, E), jnp.float32)

    def check(out, weights, ref_out, ref_w, tol=1e-4):
        assert out.shape == ref_out.shape and weights.shape == ref_w.shape
        assert jnp.allclose(out, ref_out, atol=tol, rtol=tol), \
            float(jnp.max(jnp.abs(out - ref_out)))
        assert jnp.allclose(weights, ref_w, atol=tol, rtol=tol), \
            float(jnp.max(jnp.abs(weights - ref_w)))

    # 1) self-attention (query is key is value): fused QKV projection, exact
    #    softmax normalization (weights are user-visible), 2-step batch grid.
    out1, w1 = elementwise_mha_forward(query, query, query, params,
                                       num_heads=H, threshold=threshold)
    out1, w1 = jax.block_until_ready((out1, w1))
    ref1_out, ref1_w = reference_forward(query, query, query, params,
                                         num_heads=H, threshold=threshold)
    check(out1, w1, ref1_out, ref1_w)

    # 2) cross-attention with key is value: fused KV projection.
    out2, w2 = elementwise_mha_forward(query, key_t, key_t, params,
                                       num_heads=H, threshold=threshold)
    out2, w2 = jax.block_until_ready((out2, w2))
    ref2_out, ref2_w = reference_forward(query, key_t, key_t, params,
                                         num_heads=H, threshold=threshold)
    check(out2, w2, ref2_out, ref2_w)

    # 3) fully distinct q/k/v: row-tiled projection grid (tm=8 -> 2 steps).
    out3, w3 = elementwise_mha_forward(query, key_t, value, params,
                                       num_heads=H, threshold=threshold, tm=8)
    out3, w3 = jax.block_until_ready((out3, w3))
    ref3_out, ref3_w = reference_forward(query, key_t, value, params,
                                         num_heads=H, threshold=threshold)
    check(out3, w3, ref3_out, ref3_w)

    # 4) need_weights=False: probability writeback elided; softmax denominator
    #    uses the EUP approximate reciprocal (looser tolerance).
    out4, w4 = elementwise_mha_forward(query, query, query, params,
                                       num_heads=H, threshold=threshold,
                                       need_weights=False)
    out4 = jax.block_until_ready(out4)
    assert w4 is None
    assert jnp.allclose(out4, ref1_out, atol=5e-3, rtol=5e-3)

    print("KERNEL_OK")
</pallas_src>

<mosaic_0001>
module attributes {stable_mosaic.version = 11 : i64} {
  func.func @_binarize_weight_kernel(%arg0: i32, %arg1: memref<96x32xf32, #tpu.memory_space<vmem>>, %arg2: memref<96x32xf32, #tpu.memory_space<vmem>>, %arg3: memref<96x32xf32, #tpu.memory_space<vmem>>) attributes {dimension_semantics = [#tpu.dimension_semantics<parallel>], iteration_bounds = array<i64: 1>, scalar_prefetch = 0 : i64, scratch_operands = 0 : i64, tpu.core_type = #tpu.core_type<tc>, window_params = [{transform_indices = @transform_0, window_bounds = array<i64: 96, 32>}, {transform_indices = @transform_1, window_bounds = array<i64: 96, 32>}, {transform_indices = @transform_2, window_bounds = array<i64: 96, 32>}]} {
    %c0 = arith.constant 0 : index
    %c0_0 = arith.constant 0 : index
    %0 = vector.load %arg2[%c0, %c0_0] : memref<96x32xf32, #tpu.memory_space<vmem>>, vector<96x32xf32>
    %cst = arith.constant 5.000000e-03 : f32
    %1 = vector.broadcast %cst : f32 to vector<96x32xf32>
    %2 = arith.cmpf ogt, %0, %1 : vector<96x32xf32>
    %c0_1 = arith.constant 0 : index
    %c0_2 = arith.constant 0 : index
    %3 = vector.load %arg1[%c0_1, %c0_2] : memref<96x32xf32, #tpu.memory_space<vmem>>, vector<96x32xf32>
    %cst_3 = arith.constant 0.000000e+00 : f32
    %4 = vector.broadcast %cst_3 : f32 to vector<96x32xf32>
    %5 = arith.select %2, %3, %4 : vector<96x32xi1>, vector<96x32xf32>
    %c0_4 = arith.constant 0 : index
    %c0_5 = arith.constant 0 : index
    %6 = vector.load %arg3[%c0_4, %c0_5] : memref<96x32xf32, #tpu.memory_space<vmem>>, vector<96x32xf32>
    tpu.vector_store %arg3[%c0_4, %c0_5], %5 {strides = array<i32>} : memref<96x32xf32, #tpu.memory_space<vmem>>, vector<96x32xf32>,
    return
  }
  func.func @transform_0(%arg0: i32) -> (i32, i32) {
    %c0_i32 = arith.constant 0 : i32
    %c0_i32_0 = arith.constant 0 : i32
    return %arg0, %c0_i32 : i32, i32
  }
  func.func @transform_1(%arg0: i32) -> (i32, i32) {
    %c0_i32 = arith.constant 0 : i32
    %c0_i32_0 = arith.constant 0 : i32
    return %arg0, %c0_i32 : i32, i32
  }
  func.func @transform_2(%arg0: i32) -> (i32, i32) {
    %c0_i32 = arith.constant 0 : i32
    %c0_i32_0 = arith.constant 0 : i32
    return %arg0, %c0_i32 : i32, i32
  }
}

</mosaic_0001>

<bundles_post_ra>
// kernel: tpu_custom_call.1
= control target key start
LH: loop header
LB: loop body
LE: loop exit
PB: predicated region body
PF: predicated region fallthrough
CT: control target
= control target key end

     0   :  { %vm59_vm0 = vcmask 261120   ;;  %s211_s0 = inlined_call_operand.vmem [shape: f32[96,32], index: 0, kind: input, shape index: {}]   ;;  %s212_s1 = inlined_call_operand.vmem [shape: f32[96,32], index: 1, kind: input, shape index: {}]   ;;  %s213_s2 = inlined_call_operand.vmem [shape: f32[96,32], index: 2, kind: output, shape index: {}]  }
   0x1   :  { %v11_v0 = vld [vmem:[%s212_s1] sm:$0xff]  ;;  %v12_v2 = vld [vmem:[%s212_s1 + $0x8] sm:$0xff]  ;;  %v13_v4 = vld [vmem:[%s212_s1 + $0x10] sm:$0xff] }
   0x2   :  { %v35_v1 = vld [vmem:[%s211_s0] sm:$0xff]  ;;  %vm23_vm1 = vcmp.gt.f32.partialorder %v11_v0, 0.005  ;;  %vm24_vm2 = vcmp.gt.f32.partialorder %v12_v2, 0.005  ;;  %v36_v3 = vld [vmem:[%s211_s0 + $0x8] sm:$0xff] }
   0x3   :  { %v47_v5 = vsel %vm23_vm1, %v35_v1, 0.0  ;;  %v48_v6 = vsel %vm24_vm2, %v36_v3, 0.0  ;;  %vm25_vm3 = vcmp.gt.f32.partialorder %v13_v4, 0.005  ;;  %v37_v7 = vld [vmem:[%s211_s0 + $0x10] sm:$0xff]  ;;  %v14_v8 = vld [vmem:[%s212_s1 + $0x18] sm:$0xff] }
   0x4   :  { %60 = vst.msk [vmem:[%s213_s2] sm:$0xff] %vm59_vm0, %v47_v5  ;;  %61 = vst.msk [vmem:[%s213_s2 + $0x8] sm:$0xff] %vm59_vm0, %v48_v6  ;;  %v49_v9 = vsel %vm25_vm3, %v37_v7, 0.0  ;;  %vm26_vm4 = vcmp.gt.f32.partialorder %v14_v8, 0.005  ;;  %v38_v10 = vld [vmem:[%s211_s0 + $0x18] sm:$0xff] }
   0x5   :  { %v15_v11 = vld [vmem:[%s212_s1 + $0x20] sm:$0xff]  ;;  %62 = vst.msk [vmem:[%s213_s2 + $0x10] sm:$0xff] %vm59_vm0, %v49_v9  ;;  %v50_v13 = vsel %vm26_vm4, %v38_v10, 0.0  ;;  %v16_v14 = vld [vmem:[%s212_s1 + $0x28] sm:$0xff]  ;;  %v17_v16 = vld [vmem:[%s212_s1 + $0x30] sm:$0xff] }
   0x6   :  { %v39_v12 = vld [vmem:[%s211_s0 + $0x20] sm:$0xff]  ;;  %vm27_vm5 = vcmp.gt.f32.partialorder %v15_v11, 0.005  ;;  %v40_v15 = vld [vmem:[%s211_s0 + $0x28] sm:$0xff]  ;;  %63 = vst.msk [vmem:[%s213_s2 + $0x18] sm:$0xff] %vm59_vm0, %v50_v13  ;;  %v41_v18 = vld [vmem:[%s211_s0 + $0x30] sm:$0xff] }
   0x7   :  { %v51_v17 = vsel %vm27_vm5, %v39_v12, 0.0  ;;  %vm28_vm6 = vcmp.gt.f32.partialorder %v16_v14, 0.005  ;;  %vm29_vm7 = vcmp.gt.f32.partialorder %v17_v16, 0.005  ;;  %v18_v21 = vld [vmem:[%s212_s1 + $0x38] sm:$0xff] }
   0x8   :  { %64 = vst.msk [vmem:[%s213_s2 + $0x20] sm:$0xff] %vm59_vm0, %v51_v17  ;;  %v52_v19 = vsel %vm28_vm6, %v40_v15, 0.0  ;;  %v53_v20 = vsel %vm29_vm7, %v41_v18, 0.0  ;;  %v42_v22 = vld [vmem:[%s211_s0 + $0x38] sm:$0xff]  ;;  %v19_v23 = vld [vmem:[%s212_s1 + $0x40] sm:$0xff]  ;;  %v20_v25 = vld [vmem:[%s212_s1 + $0x48] sm:$0xff] }
   0x9   :  { %65 = vst.msk [vmem:[%s213_s2 + $0x28] sm:$0xff] %vm59_vm0, %v52_v19  ;;  %66 = vst.msk [vmem:[%s213_s2 + $0x30] sm:$0xff] %vm59_vm0, %v53_v20  ;;  %vm30_vm8 = vcmp.gt.f32.partialorder %v18_v21, 0.005  ;;  %vm31_vm9 = vcmp.gt.f32.partialorder %v19_v23, 0.005 }
   0xa   :  { %v43_v24 = vld [vmem:[%s211_s0 + $0x40] sm:$0xff]  ;;  %v54_v26 = vsel %vm30_vm8, %v42_v22, 0.0  ;;  %vm32_vm10 = vcmp.gt.f32.partialorder %v20_v25, 0.005  ;;  %v44_v28 = vld [vmem:[%s211_s0 + $0x48] sm:$0xff]  ;;  %v21_v29 = vld [vmem:[%s212_s1 + $0x50] sm:$0xff] }
   0xb   :  { %v55_v27 = vsel %vm31_vm9, %v43_v24, 0.0  ;;  %67 = vst.msk [vmem:[%s213_s2 + $0x38] sm:$0xff] %vm59_vm0, %v54_v26  ;;  %v56_v30 = vsel %vm32_vm10, %v44_v28, 0.0  ;;  %vm33_vm11 = vcmp.gt.f32.partialorder %v21_v29, 0.005  ;;  %v45_v31 = vld [vmem:[%s211_s0 + $0x50] sm:$0xff] }
   0xc   :  { %68 = vst.msk [vmem:[%s213_s2 + $0x40] sm:$0xff] %vm59_vm0, %v55_v27  ;;  %v22_v32 = vld [vmem:[%s212_s1 + $0x58] sm:$0xff]  ;;  %69 = vst.msk [vmem:[%s213_s2 + $0x48] sm:$0xff] %vm59_vm0, %v56_v30  ;;  %v57_v34 = vsel %vm33_vm11, %v45_v31, 0.0 }
   0xd   :  { %v46_v33 = vld [vmem:[%s211_s0 + $0x58] sm:$0xff]  ;;  %vm34_vm12 = vcmp.gt.f32.partialorder %v22_v32, 0.005  ;;  %70 = vst.msk [vmem:[%s213_s2 + $0x50] sm:$0xff] %vm59_vm0, %v57_v34 }
   0xe   :  { %v58_v35 = vsel %vm34_vm12, %v46_v33, 0.0 }
   0xf   :  { %71 = vst.msk [vmem:[%s213_s2 + $0x58] sm:$0xff] %vm59_vm0, %v58_v35 }

</bundles_post_ra>
